<compile_context>
chip_gen: v7x
topology: tpu7x:2x2x1
jax: 0.10.0
libtpu: 0.0.40
codegen_flags: <defaults>
</compile_context>

<pallas_src>
import math
import jax
import jax.numpy as jnp
from jax import lax
from jax.experimental import pallas as pl
from jax.experimental.pallas import tpu as pltpu


def _gelu_exact(x):
    # PyTorch nn.GELU default is the exact erf form.
    return 0.5 * x * (1.0 + lax.erf(x * (1.0 / math.sqrt(2.0))))


def _round_up(x, m):
    return (x + m - 1) // m * m


def _pad2(a, rows, cols):
    pr, pc = rows - a.shape[0], cols - a.shape[1]
    if pr or pc:
        a = jnp.pad(a, ((0, pr), (0, pc)))
    return a


def _vmem_budget():
    """Usable VMEM budget (bytes): physical capacity minus ~15% headroom."""
    cap = 64 << 20  # conservative fallback (v7x per-TC VMEM)
    try:
        info = pltpu.get_tpu_info()
        cap = int(getattr(info, "vmem_capacity_bytes", cap)) or cap
    except Exception:
        pass
    return int(cap * 0.85)


# ----------------------------- kernels --------------------------------------


def _mlp_fused_kernel(x_ref, w1_ref, b1_ref, w2_ref, b2_ref, o_ref):
    """Single-pass MLP: weights fully resident, no reduction axis / accumulator."""
    h = jnp.dot(x_ref[...], w1_ref[...], preferred_element_type=jnp.float32)
    h = _gelu_exact(h + b1_ref[...].astype(jnp.float32))
    # drop1: p=0.0 -> identity
    y = jnp.dot(h.astype(w2_ref.dtype), w2_ref[...],
                preferred_element_type=jnp.float32)
    # drop2: p=0.0 -> identity
    o_ref[...] = (y + b2_ref[...].astype(jnp.float32)).astype(o_ref.dtype)


def _mlp_reduce_kernel(x_ref, w1_ref, b1_ref, w2_ref, b2_ref, o_ref, acc_ref):
    """Hidden dim tiled as the (last, 'arbitrary') reduction axis; f32 accumulator."""
    k = pl.program_id(1)

    @pl.when(k == 0)
    def _init():
        acc_ref[...] = jnp.zeros_like(acc_ref)

    h = jnp.dot(x_ref[...], w1_ref[...], preferred_element_type=jnp.float32)
    h = _gelu_exact(h + b1_ref[...].astype(jnp.float32))      # elementwise in H -> exact per chunk
    acc_ref[...] += jnp.dot(h.astype(w2_ref.dtype), w2_ref[...],
                            preferred_element_type=jnp.float32)

    @pl.when(k == pl.num_programs(1) - 1)
    def _finalize():
        o_ref[...] = (acc_ref[...] + b2_ref[...].astype(jnp.float32)).astype(o_ref.dtype)


# ----------------------------- wrapper ---------------------------------------


def mlp_pallas(x, w1, b1, w2, b2, *, tm=512, compute_dtype=jnp.bfloat16):
    """x: (B, N, C_in); w1: (C_in, H); b1: (H,); w2: (H, C_out); b2: (C_out,)."""
    B, N, C_in = x.shape
    H = w1.shape[1]
    C_out = w2.shape[1]
    M = B * N
    out_dtype = x.dtype

    cdt = jnp.dtype(compute_dtype) if compute_dtype is not None else jnp.dtype(x.dtype)
    csz = cdt.itemsize
    osz = jnp.dtype(out_dtype).itemsize
    b1sz = jnp.dtype(b1.dtype).itemsize
    b2sz = jnp.dtype(b2.dtype).itemsize

    Cp = _round_up(C_out, 128)       # lane-dense output stores
    H128 = _round_up(H, 128)

    # --- row tile: large enough to cross the weight-streaming roofline, but at
    #     least two row tiles when possible so both v7x TensorCores get work. ---
    half = -(-M // 2)
    if M <= 256:
        tm_eff = _round_up(M, 8)
    elif half <= tm:
        tm_eff = _round_up(half, 8)  # exactly 2 row tiles
    else:
        tm_eff = tm
    M_pad = _round_up(M, tm_eff)

    budget = _vmem_budget()

    def collapsed_fp(tm_):
        # double-buffered inputs/outputs + f32 intermediates (h, y)
        return (2 * tm_ * C_in * csz + 2 * C_in * H128 * csz + 2 * H128 * b1sz
                + 2 * H128 * Cp * csz + 2 * Cp * b2sz + 2 * tm_ * Cp * osz
                + tm_ * H128 * 4 + tm_ * Cp * 4)

    def reduce_fp(tm_, th_):
        return (2 * tm_ * C_in * csz + 2 * C_in * th_ * csz + 2 * th_ * b1sz
                + 2 * th_ * Cp * csz + 2 * Cp * b2sz + 2 * tm_ * Cp * osz
                + tm_ * Cp * 4 + tm_ * th_ * 4)

    use_collapsed = collapsed_fp(tm_eff) <= int(0.75 * budget)

    if use_collapsed:
        # ---- single-pass path: weights resident, grid over row tiles only ----
        H_pad = H128
        fp = collapsed_fp(tm_eff)
        grid = (M_pad // tm_eff,)
        in_specs = [
            pl.BlockSpec((tm_eff, C_in), lambda i: (i, 0)),   # x row tile
            pl.BlockSpec((C_in, H_pad), lambda i: (0, 0)),    # W1 (resident)
            pl.BlockSpec((1, H_pad), lambda i: (0, 0)),       # b1 (resident)
            pl.BlockSpec((H_pad, Cp), lambda i: (0, 0)),      # W2 (resident)
            pl.BlockSpec((1, Cp), lambda i: (0, 0)),          # b2 (resident)
        ]
        out_spec = pl.BlockSpec((tm_eff, Cp), lambda i: (i, 0))
        scratch = []
        kernel = _mlp_fused_kernel
        dim_sem = ("parallel",)
    else:
        # ---- reduction path: hidden dim tiled, f32 VMEM accumulator ----
        th_eff = min(512, H128)
        while True:
            fp = reduce_fp(tm_eff, th_eff)
            if fp <= int(0.8 * budget):
                break
            if th_eff > 128:
                th_eff = max(128, (th_eff // 2) // 128 * 128)
            elif tm_eff > 64:
                tm_eff = max(64, _round_up(tm_eff // 2, 8))
                M_pad = _round_up(M, tm_eff)
            else:
                break
        H_pad = _round_up(H, th_eff)
        grid = (M_pad // tm_eff, H_pad // th_eff)  # rows parallel, hidden reduction last
        in_specs = [
            pl.BlockSpec((tm_eff, C_in), lambda i, k: (i, 0)),   # x resident across k
            pl.BlockSpec((C_in, th_eff), lambda i, k: (0, k)),   # W1 hidden chunk
            pl.BlockSpec((1, th_eff), lambda i, k: (0, k)),      # b1 hidden chunk
            pl.BlockSpec((th_eff, Cp), lambda i, k: (k, 0)),     # W2 hidden chunk
            pl.BlockSpec((1, Cp), lambda i, k: (0, 0)),          # b2 resident
        ]
        out_spec = pl.BlockSpec((tm_eff, Cp), lambda i, k: (i, 0))
        scratch = [pltpu.VMEM((tm_eff, Cp), jnp.float32)]
        kernel = _mlp_reduce_kernel
        dim_sem = ("parallel", "arbitrary")

    # --- wrapper-side padding + bf16 cast (native MXU path, f32 accumulation) ---
    x2d = _pad2(x.reshape(M, C_in), M_pad, C_in).astype(cdt)
    w1p = _pad2(w1, C_in, H_pad).astype(cdt)
    b1p = _pad2(b1.reshape(1, H), 1, H_pad)
    w2p = _pad2(w2, H_pad, Cp).astype(cdt)
    b2p = _pad2(b2.reshape(1, C_out), 1, Cp)

    # VMEM request: actual footprint + margin, never above the physical budget.
    vmem_limit = int(min(budget, max(int(fp * 1.25) + (4 << 20), 32 << 20)))

    out2d = pl.pallas_call(
        kernel,
        out_shape=jax.ShapeDtypeStruct((M_pad, Cp), out_dtype),
        grid_spec=pltpu.PrefetchScalarGridSpec(
            num_scalar_prefetch=0,
            grid=grid,
            in_specs=in_specs,
            out_specs=out_spec,
            scratch_shapes=scratch,
        ),
        compiler_params=pltpu.CompilerParams(
            dimension_semantics=dim_sem,
            vmem_limit_bytes=vmem_limit,
        ),
    )(x2d, w1p, b1p, w2p, b2p)

    return out2d[:M, :C_out].reshape(B, N, C_out)


def init_mlp_params(key, in_features, hidden_features, out_features, dtype=jnp.float32):
    """Deterministic init matching nn.Linear shapes (weights stored transposed:
    (in, out) so the kernel does x @ W)."""
    k1, k2, k3, k4 = jax.random.split(key, 4)
    lim1 = 1.0 / math.sqrt(in_features)
    lim2 = 1.0 / math.sqrt(hidden_features)
    w1 = jax.random.uniform(k1, (in_features, hidden_features), dtype, -lim1, lim1)
    b1 = jax.random.uniform(k2, (hidden_features,), dtype, -lim1, lim1)
    w2 = jax.random.uniform(k3, (hidden_features, out_features), dtype, -lim2, lim2)
    b2 = jax.random.uniform(k4, (out_features,), dtype, -lim2, lim2)
    return w1, b1, w2, b2


if __name__ == "__main__":
    key = jax.random.PRNGKey(0)
    kx, kp = jax.random.split(key)

    B, N = 2, 8            # batch, sequence
    in_features = 32
    hidden_features = 64
    out_features = 32      # out_features defaults to in_features in the module

    x = jax.random.normal(kx, (B, N, in_features), dtype=jnp.float32)
    w1, b1, w2, b2 = init_mlp_params(kp, in_features, hidden_features, out_features)

    y = mlp_pallas(x, w1, b1, w2, b2)
    y = jax.block_until_ready(y)

    # Reference matching the kernel's bf16 MXU path (f32 accumulation, exact-erf GELU).
    cdt = jnp.bfloat16
    xb = x.reshape(-1, in_features).astype(cdt)
    h_ref = _gelu_exact(
        jnp.dot(xb, w1.astype(cdt), preferred_element_type=jnp.float32) + b1)
    y_ref = (jnp.dot(h_ref.astype(cdt), w2.astype(cdt),
                     preferred_element_type=jnp.float32) + b2)
    y_ref = y_ref.reshape(B, N, out_features).astype(x.dtype)
    assert jnp.allclose(y, y_ref, atol=1e-2, rtol=1e-2), \
        float(jnp.max(jnp.abs(y - y_ref)))

    # Loose check against the pure-f32 reference (semantic fidelity of the module).
    h32 = jax.nn.gelu(x.reshape(-1, in_features) @ w1 + b1, approximate=False)
    y32 = (h32 @ w2 + b2).reshape(B, N, out_features)
    assert jnp.allclose(y, y32, atol=7.5e-2, rtol=7.5e-2), \
        float(jnp.max(jnp.abs(y - y32)))

    print("KERNEL_OK")
</pallas_src>

<mosaic_0001>
module attributes {stable_mosaic.version = 11 : i64} {
  func.func @_mlp_fused_kernel(%arg0: i32, %arg1: memref<16x32xbf16, #tpu.memory_space<vmem>>, %arg2: memref<32x128xbf16, #tpu.memory_space<vmem>>, %arg3: memref<1x128xf32, #tpu.memory_space<vmem>>, %arg4: memref<128x128xbf16, #tpu.memory_space<vmem>>, %arg5: memref<1x128xf32, #tpu.memory_space<vmem>>, %arg6: memref<16x128xf32, #tpu.memory_space<vmem>>) attributes {dimension_semantics = [#tpu.dimension_semantics<parallel>], iteration_bounds = array<i64: 1>, scalar_prefetch = 0 : i64, scratch_operands = 0 : i64, tpu.core_type = #tpu.core_type<tc>, window_params = [{transform_indices = @transform_0, window_bounds = array<i64: 16, 32>}, {pipeline_mode = #tpu.pipeline_mode<synchronous>, transform_indices = @transform_1, window_bounds = array<i64: 32, 128>}, {pipeline_mode = #tpu.pipeline_mode<synchronous>, transform_indices = @transform_2, window_bounds = array<i64: 1, 128>}, {pipeline_mode = #tpu.pipeline_mode<synchronous>, transform_indices = @transform_3, window_bounds = array<i64: 128, 128>}, {pipeline_mode = #tpu.pipeline_mode<synchronous>, transform_indices = @transform_4, window_bounds = array<i64: 1, 128>}, {transform_indices = @transform_5, window_bounds = array<i64: 16, 128>}]} {
    %c0 = arith.constant 0 : index
    %c0_0 = arith.constant 0 : index
    %0 = vector.load %arg1[%c0, %c0_0] : memref<16x32xbf16, #tpu.memory_space<vmem>>, vector<16x32xbf16>
    %c0_1 = arith.constant 0 : index
    %c0_2 = arith.constant 0 : index
    %1 = vector.load %arg2[%c0_1, %c0_2] : memref<32x128xbf16, #tpu.memory_space<vmem>>, vector<32x128xbf16>
    %cst = arith.constant dense<0.000000e+00> : vector<16x128xf32>
    %2 = tpu.matmul %0, %1, %cst {dimension_numbers = #tpu.dot_dimension_numbers<[1], [0], [0], [1], [0, 0, 1, 1], [], []>} : vector<16x32xbf16>, vector<32x128xbf16>, vector<16x128xf32> -> vector<16x128xf32>
    %c0_3 = arith.constant 0 : index
    %c0_4 = arith.constant 0 : index
    %3 = vector.load %arg3[%c0_3, %c0_4] : memref<1x128xf32, #tpu.memory_space<vmem>>, vector<1x128xf32>
    %4 = vector.broadcast %3 : vector<1x128xf32> to vector<16x128xf32>
    %5 = arith.addf %2, %4 : vector<16x128xf32>
    %cst_5 = arith.constant 5.000000e-01 : f32
    %6 = vector.broadcast %cst_5 : f32 to vector<16x128xf32>
    %7 = arith.mulf %6, %5 : vector<16x128xf32>
    %cst_6 = arith.constant 0.707106769 : f32
    %8 = vector.broadcast %cst_6 : f32 to vector<16x128xf32>
    %9 = arith.mulf %5, %8 : vector<16x128xf32>
    %10 = math.erf %9 : vector<16x128xf32>
    %cst_7 = arith.constant 1.000000e+00 : f32
    %11 = vector.broadcast %cst_7 : f32 to vector<16x128xf32>
    %12 = arith.addf %11, %10 : vector<16x128xf32>
    %13 = arith.mulf %7, %12 : vector<16x128xf32>
    %14 = arith.truncf %13 : vector<16x128xf32> to vector<16x128xbf16>
    %c0_8 = arith.constant 0 : index
    %c0_9 = arith.constant 0 : index
    %15 = vector.load %arg4[%c0_8, %c0_9] : memref<128x128xbf16, #tpu.memory_space<vmem>>, vector<128x128xbf16>
    %cst_10 = arith.constant dense<0.000000e+00> : vector<16x128xf32>
    %16 = tpu.matmul %14, %15, %cst_10 {dimension_numbers = #tpu.dot_dimension_numbers<[1], [0], [0], [1], [0, 0, 1, 1], [], []>} : vector<16x128xbf16>, vector<128x128xbf16>, vector<16x128xf32> -> vector<16x128xf32>
    %c0_11 = arith.constant 0 : index
    %c0_12 = arith.constant 0 : index
    %17 = vector.load %arg5[%c0_11, %c0_12] : memref<1x128xf32, #tpu.memory_space<vmem>>, vector<1x128xf32>
    %18 = vector.broadcast %17 : vector<1x128xf32> to vector<16x128xf32>
    %19 = arith.addf %16, %18 : vector<16x128xf32>
    %c0_13 = arith.constant 0 : index
    %c0_14 = arith.constant 0 : index
    %20 = vector.load %arg6[%c0_13, %c0_14] : memref<16x128xf32, #tpu.memory_space<vmem>>, vector<16x128xf32>
    tpu.vector_store %arg6[%c0_13, %c0_14], %19 {strides = array<i32>} : memref<16x128xf32, #tpu.memory_space<vmem>>, vector<16x128xf32>,
    return
  }
  func.func @transform_0(%arg0: i32) -> (i32, i32) {
    %c0_i32 = arith.constant 0 : i32
    %c0_i32_0 = arith.constant 0 : i32
    return %arg0, %c0_i32 : i32, i32
  }
  func.func @transform_1(%arg0: i32) -> (i32, i32) {
    %c0_i32 = arith.constant 0 : i32
    %c0_i32_0 = arith.constant 0 : i32
    %c0_i32_1 = arith.constant 0 : i32
    return %c0_i32, %c0_i32_0 : i32, i32
  }
  func.func @transform_2(%arg0: i32) -> (i32, i32) {
    %c0_i32 = arith.constant 0 : i32
    %c0_i32_0 = arith.constant 0 : i32
    %c0_i32_1 = arith.constant 0 : i32
    return %c0_i32, %c0_i32_0 : i32, i32
  }
  func.func @transform_3(%arg0: i32) -> (i32, i32) {
    %c0_i32 = arith.constant 0 : i32
    %c0_i32_0 = arith.constant 0 : i32
    %c0_i32_1 = arith.constant 0 : i32
    return %c0_i32, %c0_i32_0 : i32, i32
  }
  func.func @transform_4(%arg0: i32) -> (i32, i32) {
    %c0_i32 = arith.constant 0 : i32
    %c0_i32_0 = arith.constant 0 : i32
    %c0_i32_1 = arith.constant 0 : i32
    return %c0_i32, %c0_i32_0 : i32, i32
  }
  func.func @transform_5(%arg0: i32) -> (i32, i32) {
    %c0_i32 = arith.constant 0 : i32
    %c0_i32_0 = arith.constant 0 : i32
    return %arg0, %c0_i32 : i32, i32
  }
}

</mosaic_0001>

<bundles_post_ra>
// kernel: tpu_custom_call.1
= control target key start
LH: loop header
LB: loop body
LE: loop exit
PB: predicated region body
PF: predicated region fallthrough
CT: control target
= control target key end

     0   :  { %10 = vsyncpa [#allocation3], 0  ;;  %s564_s0 = inlined_call_operand.hbm [shape: bf16[16,32], index: 0, kind: input, shape index: {}]   ;;  %s565_s1 = inlined_call_operand.hbm [shape: bf16[32,128], index: 1, kind: input, shape index: {}]   ;;  %s566_s2 = inlined_call_operand.vmem [shape: f32[1,128], index: 2, kind: input, shape index: {}]   ;;  %s567_s3 = inlined_call_operand.hbm [shape: bf16[128,128], index: 3, kind: input, shape index: {}]   ;;  %s568_s4 = inlined_call_operand.vmem [shape: f32[1,128], index: 4, kind: input, shape index: {}]   ;;  %s569_s5 = inlined_call_operand.hbm [shape: f32[16,128], index: 5, kind: output, shape index: {}]  }
   0x1   :  { %11 = vsyncpa [#allocation6], 0 }
   0x2   :  { %12 = vsyncpa [#allocation4], 0  ;;  %s454_s18 = smov [#allocation5]   ;;  %s455_s20 = smov [#allocation2]  }
   0x3   :  { %s30_s19 = sshll.u32 %s454_s18, 4  ;;  %s18_s21 = sshll.u32 %s455_s20, 4  ;;  %s31_s19 = int_to_ptr.vmem [resolvable:$true] %s30_s19  ;;  %s494_s21 = int_to_ptr.vmem [resolvable:$true] %s18_s21 }
   0x4   :  { %s360_s24 = scalar_lea.hbm %s565_s1, 256 }
   0x5   :  { %p361_p0 = scmp.ne.s32.totalorder %s565_s1, %s360_s24  ;;  %p364_p1 = scmp.lt.u32.totalorder %s360_s24, %s565_s1 }
   0x7   :  { %p366_p2 = pnand %p364_p1, %p361_p0 }
   0x9   :  { %369 = shalt.err (!%p366_p2)
}
   0xa   :  { %s370_s29 = scalar_lea.vmem %s31_s19, 256  ;;  %p375_p4 = scmp.lt.s32.totalorder %s31_s19, %s31_s19 }
   0xb   :  { %p371_p3 = scmp.ne.s32.totalorder %s31_s19, %s370_s29  ;;  %p376_p5 = scmp.lt.s32.totalorder %s370_s29, %s370_s29 }
   0xd   :  { %p377_p6 = por %p376_p5, %p375_p4 }
   0xf   :  { %p378_p7 = pnand %p377_p6, %p371_p3 }
  0x11   :  { %381 = shalt.err (!%p378_p7)
}
  0x12   :  { %s456_s30 = smov 64   ;;  %s457_s6 = smov 4  }
  0x13   :  { %36 = dma.hbm_to_vmem [thread:$0]  %s565_s1, 256, %s31_s19, [#allocation6], %s456_s30, %s456_s30, %s457_s6  }
  0x14   :  { %s382_s11 = scalar_lea.hbm %s564_s0, 128 }
  0x15   :  { %p383_p8 = scmp.ne.s32.totalorder %s564_s0, %s382_s11  ;;  %p386_p9 = scmp.lt.u32.totalorder %s382_s11, %s564_s0 }
  0x17   :  { %p388_p10 = pnand %p386_p9, %p383_p8 }
  0x19   :  { %391 = shalt.err (!%p388_p10)
}
  0x1a   :  { %s392_s16 = scalar_lea.vmem %s494_s21, 128  ;;  %p397_p12 = scmp.lt.s32.totalorder %s494_s21, %s494_s21 }
  0x1b   :  { %p393_p11 = scmp.ne.s32.totalorder %s494_s21, %s392_s16  ;;  %p398_p13 = scmp.lt.s32.totalorder %s392_s16, %s392_s16 }
  0x1d   :  { %p399_p0 = por %p398_p13, %p397_p12 }
  0x1f   :  { %p400_p1 = pnand %p399_p0, %p393_p11 }
  0x21   :  { %403 = shalt.err (!%p400_p1)
}
  0x22   :  { %24 = dma.hbm_to_vmem [thread:$0]  %s564_s0, 128, %s494_s21, [#allocation3], %s456_s30, %s456_s30, %s457_s6  }
  0x23   :  { %s458_s18 = smov [#allocation7]   ;;  %s404_s23 = scalar_lea.hbm %s567_s3, 1024 }
  0x24   :  { %s44_s19 = sshll.u32 %s458_s18, 4  ;;  %p405_p2 = scmp.ne.s32.totalorder %s567_s3, %s404_s23  ;;  %s45_s19 = int_to_ptr.vmem [resolvable:$true] %s44_s19 }
  0x25   :  { %p408_p3 = scmp.lt.u32.totalorder %s404_s23, %s567_s3 }
  0x27   :  { %p410_p4 = pnand %p408_p3, %p405_p2 }
  0x29   :  { %413 = shalt.err (!%p410_p4)
}
  0x2a   :  { %s414_s28 = scalar_lea.vmem %s45_s19, 1024  ;;  %p419_p6 = scmp.lt.s32.totalorder %s45_s19, %s45_s19 }
  0x2b   :  { %p415_p5 = scmp.ne.s32.totalorder %s45_s19, %s414_s28  ;;  %p420_p7 = scmp.lt.s32.totalorder %s414_s28, %s414_s28 }
  0x2d   :  { %p421_p8 = por %p420_p7, %p419_p6 }
  0x2f   :  { %p422_p9 = pnand %p421_p8, %p415_p5 }
  0x31   :  { %425 = shalt.err (!%p422_p9)
}
  0x32   :  { %50 = dma.hbm_to_vmem [thread:$0]  %s567_s3, 1024, %s45_s19, [#allocation6], %s456_s30, %s456_s30, %s457_s6  }
  0x33   :  { %448 = dma.done.wait [#allocation3], 128  }
  0x34   :  { %449 = vsyncadd [#allocation3], 4294967168 }
  0x35   :  { %450 = dma.done.wait [#allocation6], 1280  }
  0x36   :  { %451 = vsyncadd [#allocation6], 4294966016  ;;  %v459_v0 = vmov 0.0   ;;  %vm460_vm0 = vmmov 0   ;;  %v345_v1 = vld [vmem:[#allocation5] sm:$0xff]   ;;  %v346_v2 = vld [vmem:[#allocation5 + $0x8] sm:$0xff]  }
  0x37   :  { %307 = vmatprep.subr.bf16.mxu0 %v459_v0  ;;  %311 = vmatprep.mubr.msk.bf16.mxu0 %vm460_vm0, %v459_v0  ;;  %v348_v3 = vld [vmem:[#allocation7] sm:$0xff]   ;;  %v347_v4 = vld [vmem:[#allocation2] sm:$0xff]   ;;  %vm93_vm1 = vcmask 261120   ;;  %v350_v6 = vld [vmem:[#allocation7 + $0x10] sm:$0xff]   ;;  %s461_s6 = smov [#allocation8]  }
  0x38   :  { %315 = vmatprep.subr.bf16.mxu1 %v459_v0  ;;  %331 = vmatprep.mubr.msk.bf16.mxu1 %vm460_vm0, %v459_v0  ;;  %v349_v5 = vld [vmem:[#allocation7 + $0x8] sm:$0xff]   ;;  %v351_v7 = vld [vmem:[#allocation7 + $0x18] sm:$0xff]   ;;  %v352_v8 = vld [vmem:[#allocation7 + $0x20] sm:$0xff]   ;;  %s268_s7 = sshll.u32 %s461_s6, 4  ;;  %s269_s7 = int_to_ptr.vmem [resolvable:$true] %s268_s7 }
  0x39   :  { %308 = vmatpush3.bf16.msra.mxu0 %v345_v1  ;;  %316 = vmatpush3.bf16.msra.mxu1 %v348_v3  ;;  %v353_v9 = vld [vmem:[#allocation7 + $0x28] sm:$0xff]   ;;  %v354_v10 = vld [vmem:[#allocation7 + $0x30] sm:$0xff]   ;;  %v355_v11 = vld [vmem:[#allocation7 + $0x38] sm:$0xff]   ;;  %s426_s8 = scalar_lea.vmem %s269_s7, 256  ;;  %p431_p11 = scmp.lt.s32.totalorder %s269_s7, %s269_s7 }
  0x3a   :  { %309 = vmatprep.subr.bf16.mxu0 %v459_v0  ;;  %317 = vmatprep.subr.bf16.mxu1 %v459_v0  ;;  %v281_v12 = vld [vmem:[%s566_s2] ss:$0 sm:$0xff]  ;;  %p427_p10 = scmp.ne.s32.totalorder %s269_s7, %s426_s8  ;;  %p432_p12 = scmp.lt.s32.totalorder %s426_s8, %s426_s8 }
  0x3b   :  { %v286_v30 = vld [vmem:[%s568_s4] ss:$0 sm:$0xff] }
  0x3c   :  { %p433_p13 = por %p432_p12, %p431_p11 }
  0x3d   :  { %310 = vmatpush3.bf16.msra.mxu0 %v346_v2  ;;  %318 = vmatpush3.bf16.msra.mxu1 %v349_v5 }
  0x3e   :  { %319 = vmatprep.subr.bf16.mxu1 %v459_v0  ;;  %p434_p0 = pnand %p433_p13, %p427_p10 }
  0x40   :  { %312 = vmatmul.mubr.msk.bf16.vlgmr.msra.gmra.mrb[0].mxu0 %vm93_vm1, %v347_v4 }
  0x41   :  { %320 = vmatpush3.bf16.msra.mxu1 %v350_v6 }
  0x42   :  { %321 = vmatprep.subr.bf16.mxu1 %v459_v0 }
  0x45   :  { %322 = vmatpush3.bf16.msra.mxu1 %v351_v7 }
  0x46   :  { %323 = vmatprep.subr.bf16.mxu1 %v459_v0 }
  0x49   :  { %324 = vmatpush3.bf16.msra.mxu1 %v352_v8 }
  0x4a   :  { %325 = vmatprep.subr.bf16.mxu1 %v459_v0 }
  0x4d   :  { %326 = vmatpush3.bf16.msra.mxu1 %v353_v9 }
  0x4e   :  { %327 = vmatprep.subr.bf16.mxu1 %v459_v0 }
  0x51   :  { %328 = vmatpush3.bf16.msra.mxu1 %v354_v10 }
  0x52   :  { %329 = vmatprep.subr.bf16.mxu1 %v459_v0 }
  0x55   :  { %330 = vmatpush3.bf16.msra.mxu1 %v355_v11 }
 0x113   :  { %v131_v13 = vpop.f32.mrb[0].mxu0 }
 0x114   :  { %v132_v14 = vadd.f32 %v281_v12, %v131_v13  ;;  %v313_v15 = vpop.f32.mrb[1].mxu0 }
 0x115   :  { %v134_v16 = vpop.f32.mrb[2].mxu0 }
 0x116   :  { %v140_v17 = vmul.f32 0.70710677, %v132_v14  ;;  %v135_v18 = vadd.f32 %v281_v12, %v134_v16  ;;  %v314_v19 = vpop.f32.mrb[3].mxu0  ;;  %v138_v24 = vmul.f32 0.5, %v132_v14 }
 0x118   :  { %356 = verf.f32 %v140_v17  ;;  %v141_v20 = vmul.f32 0.70710677, %v135_v18  ;;  %v139_v25 = vmul.f32 0.5, %v135_v18 }
 0x11a   :  { %358 = verf.f32 %v141_v20 }
 0x122   :  { %v357_v21 = vpop.eup %356 }
 0x123   :  { %v144_v22 = vadd.f32 1.0, %v357_v21 }
 0x124   :  { %v359_v23 = vpop.eup %358 }
 0x125   :  { %v145_v26 = vadd.f32 1.0, %v359_v23  ;;  %v146_v27 = vmul.f32 %v144_v22, %v138_v24 }
 0x127   :  { %v147_v28 = vmul.f32 %v145_v26, %v139_v25 }
 0x129   :  { %v148_v29 = vpack.c.bf16 %v147_v28, %v146_v27 }
 0x12b   :  { %332 = vmatmul.mubr.bf16.vlgmr.msra.gmra.mrb[0].mxu1 %v148_v29 }
 0x1fe   :  { %v254_v31 = vpop.f32.mrb[0].mxu1 }
 0x1ff   :  { %v255_v32 = vadd.f32 %v286_v30, %v254_v31  ;;  %v333_v33 = vpop.f32.mrb[1].mxu1 }
 0x200   :  { %v257_v34 = vpop.f32.mrb[2].mxu1 }
 0x201   :  { %261 = vst [vmem:[#allocation8] sm:$0xff] %v255_v32  ;;  %v258_v35 = vadd.f32 %v286_v30, %v257_v34  ;;  %v334_v36 = vpop.f32.mrb[3].mxu1 }
 0x203   :  { %262 = vst [vmem:[#allocation8 + $0x8] sm:$0xff] %v258_v35 }
 0x204   :  { %437 = shalt.err (!%p434_p0)
}
 0x205   :  { %s438_s10 = scalar_lea.hbm %s569_s5, 256 }
 0x206   :  { %p439_p1 = scmp.ne.s32.totalorder %s569_s5, %s438_s10  ;;  %p442_p2 = scmp.lt.u32.totalorder %s438_s10, %s569_s5 }
 0x208   :  { %p444_p3 = pnand %p442_p2, %p439_p1 }
 0x20a   :  { %447 = shalt.err (!%p444_p3)
}
 0x20b   :  { %s462_s15 = smov 128   ;;  %s463_s16 = smov 8  }
 0x20c   :  { %274 = dma.vmem_to_hbm [thread:$0]  %s269_s7, 256, %s569_s5, [#allocation4], %s462_s15, %s462_s15, %s463_s16  }
 0x20d   :  { %452 = dma.done.wait [#allocation4], 256  }
 0x20e   :  { %453 = vsyncadd [#allocation4], 4294967040 }
 0x20f   :  { %278 = vsyncpa [#allocation3], 1 }
 0x210   :  { %279 = vsyncpa [#allocation6], 1 }
 0x211   :  { %280 = vsyncpa [#allocation4], 1 }

</bundles_post_ra>
